<compile_context>
chip_gen: v5e
topology: v5e:2x2
jax: 0.10.0
libtpu: 0.0.40
codegen_flags: <defaults>
</compile_context>

<pallas_src>
import functools

import jax
import jax.numpy as jnp
import numpy as np
from jax import lax
from jax.experimental import pallas as pl
from jax.experimental.pallas import tpu as pltpu

EPS = 1e-5  # PyTorch InstanceNorm2d default eps


# ---------------------------------------------------------------------------
# Fused Pallas kernel: the whole FNA block for one sample.
# ---------------------------------------------------------------------------
def _fna_kernel(addition, k1, Ho, Wo, Cout, Cm,
                xin_ref, msk_ref,
                w1_ref, g1_ref, b1_ref,
                w2_ref, g2_ref, b2_ref,
                w3_ref, g3_ref, b3_ref, w4_ref,
                out_ref, p1, p2):
    """Feature maps use a (C, S) layout: channels on sublanes, a zero-padded
    flattened (Ho+2, Wo+2) spatial grid on lanes (S = (Ho+2)*(Wo+2)+2, data at
    lane offset 1).  Every k*k conv tap is a lane-shifted slice at static
    offset dh*(Wo+2)+dw; taps are stacked on the sublane (K) axis so each conv
    stage is a single (C_out, K) @ (K, Lo) MXU matmul with Lo filling the wide
    output-lane dimension."""
    Wp = Wo + 2
    Lo = Ho * Wp                 # conv output incl. the 2 pad columns per row
    ctr = Wp + 1                 # centre-tap offset == interior store offset
    S = (Ho + 2) * Wp + 2
    halo = Wp + 1                # lanes [0, ctr) and [ctr+Lo, S)
    C12 = Cout + Cm
    f32 = jnp.float32
    bf16 = jnp.bfloat16

    # Zero only the halo lanes; interior [ctr, ctr+Lo) is rewritten each step.
    p1[:, :halo] = jnp.zeros((C12, halo), bf16)
    p1[:, S - halo:] = jnp.zeros((C12, halo), bf16)
    p2[:, :halo] = jnp.zeros((Cm, halo), bf16)
    p2[:, S - halo:] = jnp.zeros((Cm, halo), bf16)

    mask = msk_ref[...]                       # (1, Lo): 1.0 on valid columns
    inv_cnt = 1.0 / float(Ho * Wo)

    def taps(buf, k):
        # In-register im2col: lane-shifted windows stacked on sublanes (K).
        return jnp.concatenate(
            [buf[:, dh * Wp + dw: dh * Wp + dw + Lo]
             for dh in range(k) for dw in range(k)], axis=0)

    def inst_norm_relu(acc, g, b):
        # Per-channel InstanceNorm (pad columns masked out of the statistics),
        # affine folded into one scale/shift, variance clamped at 0, then ReLU.
        accm = acc * mask
        mean = jnp.sum(accm, axis=-1, keepdims=True) * inv_cnt
        ex2 = jnp.sum(accm * accm, axis=-1, keepdims=True) * inv_cnt
        var = jnp.maximum(ex2 - mean * mean, 0.0)
        scale = g * lax.rsqrt(var + EPS)
        shift = b - mean * scale
        return jnp.maximum(acc * scale + shift, 0.0)

    # ---- stage 1: main 3x3 (stride via space-to-depth) + folded att 1x1 ----
    x_all = xin_ref[0]                                       # (Cd, S) bf16
    y1 = jnp.dot(w1_ref[...], taps(x_all, k1),
                 preferred_element_type=f32)                 # (Cout+Cm, Lo)
    f1 = y1[Cout:, :]                  # 1x1 branch; pad columns are exactly 0
    m1 = inst_norm_relu(y1[:Cout, :], g1_ref[...], b1_ref[...])
    p1[:, ctr:ctr + Lo] = jnp.concatenate([m1 * mask, f1], axis=0).astype(bf16)

    # ---- stage 2: fused main 3x3 + attention 3x3 (block-diagonal weight) ---
    y2 = jnp.dot(w2_ref[...], taps(p1[...], 3),
                 preferred_element_type=f32)                 # (Cout+Cm, Lo)
    y2 = inst_norm_relu(y2, g2_ref[...], b2_ref[...])
    feat = y2[:Cout, :]                                      # main-branch out
    f2 = y2[Cout:, :] + f1                                   # attention resid
    p2[:, ctr:ctr + Lo] = (f2 * mask).astype(bf16)

    # ---- stage 3: attention 3x3 --------------------------------------------
    y3 = jnp.dot(w3_ref[...], taps(p2[...], 3),
                 preferred_element_type=f32)                 # (Cm, Lo)
    asum = inst_norm_relu(y3, g3_ref[...], b3_ref[...]) + f2 + f1

    # ---- stage 4: 1x1 projection (K=Cm) as a VPU outer product -------------
    w4 = w4_ref[...].astype(f32)                             # (Cout, Cm)
    a16 = asum.astype(bf16).astype(f32)      # match bf16-operand conv numerics
    if Cm <= 8:
        att = w4[:, 0:1] * a16[0:1, :]
        for m in range(1, Cm):
            att = att + w4[:, m:m + 1] * a16[m:m + 1, :]
    else:
        att = jnp.dot(w4_ref[...], asum.astype(bf16),
                      preferred_element_type=f32)

    out = att * feat
    if addition:
        out = out + feat
    out_ref[0] = out                                         # (Cout, Lo) f32


# ---------------------------------------------------------------------------
# Wrapper-side layout plumbing (pure XLA relayouts, no 9x im2col in HBM)
# ---------------------------------------------------------------------------
def _space_to_depth_weights(w3, s):
    """Rearrange 3x3/stride-s HWIO weights into the matching 2x2/stride-1
    space-to-depth weight matrix of shape (4*s*s*Cin, Cout)."""
    Cin, Cout = w3.shape[2], w3.shape[3]
    wd = jnp.zeros((2, 2, s, s, Cin, Cout), w3.dtype)
    for dh in range(3):
        ti, p = (0, s - 1) if dh == 0 else (1, dh - 1)
        for dw in range(3):
            tj, q = (0, s - 1) if dw == 0 else (1, dw - 1)
            wd = wd.at[ti, tj, p, q].set(w3[dh, dw])
    return wd.reshape(4 * s * s * Cin, Cout)


def _prepare_input(x_nchw, s):
    """Space-to-depth (if stride>1) + zero-pad + flatten to (N, Cd, S) bf16
    with channels on the (future) sublane axis and flat spatial on lanes."""
    N, Cin, H, W = x_nchw.shape
    Ho = (H - 1) // s + 1
    Wo = (W - 1) // s + 1
    if s == 1:
        xd = x_nchw
    else:
        xpad = jnp.pad(x_nchw,
                       ((0, 0), (0, 0), (0, Ho * s - H), (0, Wo * s - W)))
        xd = xpad.reshape(N, Cin, Ho, s, Wo, s)
        xd = xd.transpose(0, 3, 5, 1, 2, 4).reshape(N, s * s * Cin, Ho, Wo)
    Cd = xd.shape[1]
    Wp = Wo + 2
    xi = jnp.pad(xd, ((0, 0), (0, 0), (1, 1), (1, 1)))   # (N, Cd, Ho+2, Wp)
    xi = xi.reshape(N, Cd, (Ho + 2) * Wp)
    xi = jnp.pad(xi, ((0, 0), (0, 0), (1, 1)))           # (N, Cd, S)
    return xi.astype(jnp.bfloat16), Ho, Wo, Cd


def _pick_vmem_limit():
    cap = 64 * 1024 * 1024
    try:
        cap = int(getattr(pltpu.get_tpu_info(), "vmem_capacity_bytes", cap))
    except Exception:
        pass
    # ~half of physical VMEM: 64 MiB on v5e/v6e, 32 MiB on v7x.
    return max(16 * 1024 * 1024, min(cap // 2, 96 * 1024 * 1024))


def fna_forward(x_nchw, p, step, addition):
    x_nchw = x_nchw.astype(jnp.float32)
    N, Cin, H, W = x_nchw.shape
    Cout = p["w_m1"].shape[-1]
    Cm = p["w_a1"].shape[-1]
    C12 = Cout + Cm
    s = int(step)
    k1 = 3 if s == 1 else 2

    xin, Ho, Wo, Cd = _prepare_input(x_nchw, s)
    Wp = Wo + 2
    Lo = Ho * Wp
    S = (Ho + 2) * Wp + 2
    bf16 = jnp.bfloat16
    f32 = jnp.float32

    # -- stage-1 weight: main conv (space-to-depth if strided) + folded 1x1 --
    if s == 1:
        w1_mat = p["w_m1"].reshape(9 * Cin, Cout)
        centre = 4                      # tap (dh=1, dw=1)
    else:
        w1_mat = _space_to_depth_weights(p["w_m1"], s)
        centre = 3                      # tap (ti=1, tj=1)
    K1 = w1_mat.shape[0]
    assert K1 == k1 * k1 * Cd
    w1c = jnp.zeros((K1, C12), f32).at[:, :Cout].set(w1_mat)
    w1c = w1c.at[centre * Cd:centre * Cd + Cin, Cout:].set(p["w_a1"])
    w1c = w1c.T.astype(bf16)                                 # (C12, K1)

    # -- stage-2 weight: block-diagonal [w_m2 | w_a2] --------------------------
    w2c = jnp.zeros((9, C12, C12), f32)
    w2c = w2c.at[:, :Cout, :Cout].set(p["w_m2"].reshape(9, Cout, Cout))
    w2c = w2c.at[:, Cout:, Cout:].set(p["w_a2"].reshape(9, Cm, Cm))
    w2c = w2c.reshape(9 * C12, C12).T.astype(bf16)           # (C12, 9*C12)

    w3m = p["w_a3"].reshape(9 * Cm, Cm).T.astype(bf16)       # (Cm, 9*Cm)
    w4t = p["w_a4"].T.astype(bf16)                           # (Cout, Cm)

    g1 = p["g_m1"].reshape(Cout, 1).astype(f32)
    b1 = p["b_m1"].reshape(Cout, 1).astype(f32)
    g2c = jnp.concatenate([p["g_m2"], p["g_a2"]]).reshape(C12, 1).astype(f32)
    b2c = jnp.concatenate([p["b_m2"], p["b_a2"]]).reshape(C12, 1).astype(f32)
    g3 = p["g_a3"].reshape(Cm, 1).astype(f32)
    b3 = p["b_a3"].reshape(Cm, 1).astype(f32)

    # Valid-column mask over the flat (Ho, Wp) output layout (cols 1..Wo).
    colw = np.arange(Lo, dtype=np.int32) % Wp
    mask_arr = jnp.asarray(((colw >= 1) & (colw <= Wo))
                           .astype(np.float32).reshape(1, Lo))

    rep = lambda a: pl.BlockSpec(a.shape, lambda n: (0, 0))
    in_specs = [pl.BlockSpec((1, Cd, S), lambda n: (n, 0, 0)),
                rep(mask_arr),
                rep(w1c), rep(g1), rep(b1),
                rep(w2c), rep(g2c), rep(b2c),
                rep(w3m), rep(g3), rep(b3), rep(w4t)]

    flops = 2 * N * Lo * (C12 * K1 + 9 * C12 * C12 + 9 * Cm * Cm + Cout * Cm)
    weight_bytes = sum(int(np.prod(w.shape)) * 2 for w in (w1c, w2c, w3m, w4t))
    cost = pl.CostEstimate(
        flops=int(flops),
        transcendentals=int(N * (Cout + C12 + Cm)),
        bytes_accessed=int(N * Cd * S * 2 + N * Cout * Lo * 4 + weight_bytes))

    out_flat = pl.pallas_call(
        functools.partial(_fna_kernel, bool(addition), k1, Ho, Wo, Cout, Cm),
        out_shape=jax.ShapeDtypeStruct((N, Cout, Lo), jnp.float32),
        grid=(N,),
        in_specs=in_specs,
        out_specs=pl.BlockSpec((1, Cout, Lo), lambda n: (n, 0, 0)),
        scratch_shapes=[pltpu.VMEM((C12, S), jnp.bfloat16),   # padded m1 | f1
                        pltpu.VMEM((Cm, S), jnp.bfloat16)],   # padded f2
        compiler_params=pltpu.CompilerParams(
            dimension_semantics=("parallel",),
            vmem_limit_bytes=_pick_vmem_limit()),
        cost_estimate=cost,
    )(xin, mask_arr, w1c, g1, b1, w2c, g2c, b2c, w3m, g3, b3, w4t)

    # (N, Cout, Ho, Wp) -> drop the two pad columns; already NCHW.
    return out_flat.reshape(N, Cout, Ho, Wp)[:, :, :, 1:Wo + 1]


# ---------------------------------------------------------------------------
# Pure-JAX reference (correctness check; bf16 conv operands like the kernel).
# Note: the kernel intentionally uses bf16 matmul operands + folded IN affine,
# so agreement with a pure-f32 PyTorch FNA is at the ~1e-2 level by design.
# ---------------------------------------------------------------------------
def fna_reference(x_nchw, p, step, addition):
    x = jnp.transpose(x_nchw, (0, 2, 3, 1)).astype(jnp.float32)
    bf16 = jnp.bfloat16

    def conv(y, w, stride, pad):
        return lax.conv_general_dilated(
            y.astype(bf16), w.astype(bf16), (stride, stride),
            ((pad, pad), (pad, pad)),
            dimension_numbers=("NHWC", "HWIO", "NHWC"),
            preferred_element_type=jnp.float32)

    def in_relu(y, g, b):
        m = y.mean(axis=(1, 2), keepdims=True)
        v = ((y - m) ** 2).mean(axis=(1, 2), keepdims=True)
        z = (y - m) / jnp.sqrt(v + EPS) * g.reshape(1, 1, 1, -1) \
            + b.reshape(1, 1, 1, -1)
        return jnp.maximum(z, 0.0)

    w_a1 = p["w_a1"].reshape(1, 1, *p["w_a1"].shape)
    w_a4 = p["w_a4"].reshape(1, 1, *p["w_a4"].shape)
    f1 = conv(x, w_a1, step, 0)
    f2 = in_relu(conv(f1, p["w_a2"], 1, 1), p["g_a2"], p["b_a2"]) + f1
    att = in_relu(conv(f2, p["w_a3"], 1, 1), p["g_a3"], p["b_a3"]) + f2 + f1
    att = conv(att, w_a4, 1, 0)
    m1 = in_relu(conv(x, p["w_m1"], step, 1), p["g_m1"], p["b_m1"])
    feat = in_relu(conv(m1, p["w_m2"], 1, 1), p["g_m2"], p["b_m2"])
    out = att * feat + (feat if addition else 0.0)
    return jnp.transpose(out, (0, 3, 1, 2))


# ---------------------------------------------------------------------------
def init_params(key, Cin, Cout):
    Cm = Cin // 8
    ks = jax.random.split(key, 16)

    def w(k, shape, fan_in):
        return jax.random.normal(k, shape, jnp.float32) / np.sqrt(fan_in)

    def affine(k1, k2, c):
        return (1.0 + 0.1 * jax.random.normal(k1, (c,), jnp.float32),
                0.1 * jax.random.normal(k2, (c,), jnp.float32))

    p = {}
    p["w_m1"] = w(ks[0], (3, 3, Cin, Cout), 9 * Cin)
    p["g_m1"], p["b_m1"] = affine(ks[1], ks[2], Cout)
    p["w_m2"] = w(ks[3], (3, 3, Cout, Cout), 9 * Cout)
    p["g_m2"], p["b_m2"] = affine(ks[4], ks[5], Cout)
    p["w_a1"] = w(ks[6], (Cin, Cm), Cin)
    p["w_a2"] = w(ks[7], (3, 3, Cm, Cm), 9 * Cm)
    p["g_a2"], p["b_a2"] = affine(ks[8], ks[9], Cm)
    p["w_a3"] = w(ks[10], (3, 3, Cm, Cm), 9 * Cm)
    p["g_a3"], p["b_a3"] = affine(ks[11], ks[12], Cm)
    p["w_a4"] = w(ks[13], (Cm, Cout), Cm)
    return p


if __name__ == "__main__":
    key = jax.random.PRNGKey(0)
    k_x, k_p = jax.random.split(key)

    N, Cin, H, W = 2, 16, 16, 16   # Cin must be a multiple of 8 (in_channels // 8)
    Cout, step, addition = 8, 2, True

    x = jax.random.normal(k_x, (N, Cin, H, W), jnp.float32)   # NCHW, like PyTorch
    params = init_params(k_p, Cin, Cout)

    fwd = jax.jit(functools.partial(fna_forward, step=step, addition=addition))
    out = jax.block_until_ready(fwd(x, params))

    ref = fna_reference(x, params, step, addition)
    np.testing.assert_allclose(np.asarray(out), np.asarray(ref),
                               rtol=1e-2, atol=1e-2)

    print("KERNEL_OK")
</pallas_src>

<mosaic_0001>
module attributes {stable_mosaic.version = 11 : i64} {
  func.func @_fna_kernel(%arg0: i32, %arg1: memref<1x64x102xbf16, #tpu.memory_space<vmem>>, %arg2: memref<1x80xf32, #tpu.memory_space<vmem>>, %arg3: memref<10x256xbf16, #tpu.memory_space<vmem>>, %arg4: memref<8x1xf32, #tpu.memory_space<vmem>>, %arg5: memref<8x1xf32, #tpu.memory_space<vmem>>, %arg6: memref<10x90xbf16, #tpu.memory_space<vmem>>, %arg7: memref<10x1xf32, #tpu.memory_space<vmem>>, %arg8: memref<10x1xf32, #tpu.memory_space<vmem>>, %arg9: memref<2x18xbf16, #tpu.memory_space<vmem>>, %arg10: memref<2x1xf32, #tpu.memory_space<vmem>>, %arg11: memref<2x1xf32, #tpu.memory_space<vmem>>, %arg12: memref<8x2xbf16, #tpu.memory_space<vmem>>, %arg13: memref<1x8x80xf32, #tpu.memory_space<vmem>>, %arg14: memref<10x102xbf16, #tpu.memory_space<vmem>>, %arg15: memref<2x102xbf16, #tpu.memory_space<vmem>>) attributes {dimension_semantics = [#tpu.dimension_semantics<parallel>], iteration_bounds = array<i64: 2>, scalar_prefetch = 0 : i64, scratch_operands = 2 : i64, tpu.core_type = #tpu.core_type<tc>, window_params = [{transform_indices = @transform_0, window_bounds = array<i64: 1, 64, 102>}, {pipeline_mode = #tpu.pipeline_mode<synchronous>, transform_indices = @transform_1, window_bounds = array<i64: 1, 80>}, {pipeline_mode = #tpu.pipeline_mode<synchronous>, transform_indices = @transform_2, window_bounds = array<i64: 10, 256>}, {pipeline_mode = #tpu.pipeline_mode<synchronous>, transform_indices = @transform_3, window_bounds = array<i64: 8, 1>}, {pipeline_mode = #tpu.pipeline_mode<synchronous>, transform_indices = @transform_4, window_bounds = array<i64: 8, 1>}, {pipeline_mode = #tpu.pipeline_mode<synchronous>, transform_indices = @transform_5, window_bounds = array<i64: 10, 90>}, {pipeline_mode = #tpu.pipeline_mode<synchronous>, transform_indices = @transform_6, window_bounds = array<i64: 10, 1>}, {pipeline_mode = #tpu.pipeline_mode<synchronous>, transform_indices = @transform_7, window_bounds = array<i64: 10, 1>}, {pipeline_mode = #tpu.pipeline_mode<synchronous>, transform_indices = @transform_8, window_bounds = array<i64: 2, 18>}, {pipeline_mode = #tpu.pipeline_mode<synchronous>, transform_indices = @transform_9, window_bounds = array<i64: 2, 1>}, {pipeline_mode = #tpu.pipeline_mode<synchronous>, transform_indices = @transform_10, window_bounds = array<i64: 2, 1>}, {pipeline_mode = #tpu.pipeline_mode<synchronous>, transform_indices = @transform_11, window_bounds = array<i64: 8, 2>}, {transform_indices = @transform_12, window_bounds = array<i64: 1, 8, 80>}]} {
    %cst = arith.constant 0.000000e+00 : bf16
    %0 = vector.broadcast %cst : bf16 to vector<10x11xbf16>
    %c0 = arith.constant 0 : index
    %c0_0 = arith.constant 0 : index
    %1 = vector.load %arg14[%c0, %c0_0] : memref<10x102xbf16, #tpu.memory_space<vmem>>, vector<10x11xbf16>
    tpu.vector_store %arg14[%c0, %c0_0], %0 {strides = array<i32>} : memref<10x102xbf16, #tpu.memory_space<vmem>>, vector<10x11xbf16>,
    %cst_1 = arith.constant 0.000000e+00 : bf16
    %2 = vector.broadcast %cst_1 : bf16 to vector<10x11xbf16>
    %c0_2 = arith.constant 0 : index
    %c91 = arith.constant 91 : index
    %3 = vector.load %arg14[%c0_2, %c91] : memref<10x102xbf16, #tpu.memory_space<vmem>>, vector<10x11xbf16>
    tpu.vector_store %arg14[%c0_2, %c91], %2 {strides = array<i32>} : memref<10x102xbf16, #tpu.memory_space<vmem>>, vector<10x11xbf16>,
    %cst_3 = arith.constant 0.000000e+00 : bf16
    %4 = vector.broadcast %cst_3 : bf16 to vector<2x11xbf16>
    %c0_4 = arith.constant 0 : index
    %c0_5 = arith.constant 0 : index
    %5 = vector.load %arg15[%c0_4, %c0_5] : memref<2x102xbf16, #tpu.memory_space<vmem>>, vector<2x11xbf16>
    tpu.vector_store %arg15[%c0_4, %c0_5], %4 {strides = array<i32>} : memref<2x102xbf16, #tpu.memory_space<vmem>>, vector<2x11xbf16>,
    %cst_6 = arith.constant 0.000000e+00 : bf16
    %6 = vector.broadcast %cst_6 : bf16 to vector<2x11xbf16>
    %c0_7 = arith.constant 0 : index
    %c91_8 = arith.constant 91 : index
    %7 = vector.load %arg15[%c0_7, %c91_8] : memref<2x102xbf16, #tpu.memory_space<vmem>>, vector<2x11xbf16>
    tpu.vector_store %arg15[%c0_7, %c91_8], %6 {strides = array<i32>} : memref<2x102xbf16, #tpu.memory_space<vmem>>, vector<2x11xbf16>,
    %c0_9 = arith.constant 0 : index
    %c0_10 = arith.constant 0 : index
    %8 = vector.load %arg2[%c0_9, %c0_10] : memref<1x80xf32, #tpu.memory_space<vmem>>, vector<1x80xf32>
    %c0_11 = arith.constant 0 : index
    %c0_12 = arith.constant 0 : index
    %c0_13 = arith.constant 0 : index
    %9 = vector.load %arg1[%c0_11, %c0_12, %c0_13] : memref<1x64x102xbf16, #tpu.memory_space<vmem>>, vector<1x64x102xbf16>
    %10 = vector.shape_cast %9 : vector<1x64x102xbf16> to vector<64x102xbf16>
    %c0_14 = arith.constant 0 : index
    %c0_15 = arith.constant 0 : index
    %11 = vector.load %arg3[%c0_14, %c0_15] : memref<10x256xbf16, #tpu.memory_space<vmem>>, vector<10x256xbf16>
    %12 = vector.extract_strided_slice %10 {offsets = [0, 0], sizes = [64, 80], strides = [1, 1]} : vector<64x102xbf16> to vector<64x80xbf16>
    %13 = vector.extract_strided_slice %10 {offsets = [0, 1], sizes = [64, 80], strides = [1, 1]} : vector<64x102xbf16> to vector<64x80xbf16>
    %14 = vector.extract_strided_slice %10 {offsets = [0, 10], sizes = [64, 80], strides = [1, 1]} : vector<64x102xbf16> to vector<64x80xbf16>
    %15 = vector.extract_strided_slice %10 {offsets = [0, 11], sizes = [64, 80], strides = [1, 1]} : vector<64x102xbf16> to vector<64x80xbf16>
    %16 = tpu.concatenate %12, %13, %14, %15 in 0 : vector<64x80xbf16>, vector<64x80xbf16>, vector<64x80xbf16>, vector<64x80xbf16> -> vector<256x80xbf16>
    %cst_16 = arith.constant dense<0.000000e+00> : vector<10x80xf32>
    %17 = tpu.matmul %11, %16, %cst_16 {dimension_numbers = #tpu.dot_dimension_numbers<[1], [0], [0], [1], [0, 0, 1, 1], [], []>} : vector<10x256xbf16>, vector<256x80xbf16>, vector<10x80xf32> -> vector<10x80xf32>
    %18 = vector.extract_strided_slice %17 {offsets = [8, 0], sizes = [2, 80], strides = [1, 1]} : vector<10x80xf32> to vector<2x80xf32>
    %19 = vector.extract_strided_slice %17 {offsets = [0, 0], sizes = [8, 80], strides = [1, 1]} : vector<10x80xf32> to vector<8x80xf32>
    %c0_17 = arith.constant 0 : index
    %c0_18 = arith.constant 0 : index
    %20 = vector.load %arg4[%c0_17, %c0_18] : memref<8x1xf32, #tpu.memory_space<vmem>>, vector<8x1xf32>
    %c0_19 = arith.constant 0 : index
    %c0_20 = arith.constant 0 : index
    %21 = vector.load %arg5[%c0_19, %c0_20] : memref<8x1xf32, #tpu.memory_space<vmem>>, vector<8x1xf32>
    %22 = vector.broadcast %8 : vector<1x80xf32> to vector<8x80xf32>
    %23 = arith.mulf %19, %22 : vector<8x80xf32>
    %cst_21 = arith.constant dense<0.000000e+00> : vector<8xf32>
    %24 = vector.multi_reduction <add>, %23, %cst_21 [1] : vector<8x80xf32> to vector<8xf32>
    %25 = vector.shape_cast %24 : vector<8xf32> to vector<8x1xf32>
    %cst_22 = arith.constant 1.562500e-02 : f32
    %26 = vector.broadcast %cst_22 : f32 to vector<8x1xf32>
    %27 = arith.mulf %25, %26 : vector<8x1xf32>
    %28 = arith.mulf %23, %23 : vector<8x80xf32>
    %cst_23 = arith.constant dense<0.000000e+00> : vector<8xf32>
    %29 = vector.multi_reduction <add>, %28, %cst_23 [1] : vector<8x80xf32> to vector<8xf32>
    %30 = vector.shape_cast %29 : vector<8xf32> to vector<8x1xf32>
    %cst_24 = arith.constant 1.562500e-02 : f32
    %31 = vector.broadcast %cst_24 : f32 to vector<8x1xf32>
    %32 = arith.mulf %30, %31 : vector<8x1xf32>
    %33 = arith.mulf %27, %27 : vector<8x1xf32>
    %34 = arith.subf %32, %33 : vector<8x1xf32>
    %cst_25 = arith.constant 0.000000e+00 : f32
    %35 = vector.broadcast %cst_25 : f32 to vector<8x1xf32>
    %36 = arith.maximumf %34, %35 : vector<8x1xf32>
    %cst_26 = arith.constant 9.99999974E-6 : f32
    %37 = vector.broadcast %cst_26 : f32 to vector<8x1xf32>
    %38 = arith.addf %36, %37 : vector<8x1xf32>
    %39 = math.rsqrt %38 : vector<8x1xf32>
    %40 = arith.mulf %20, %39 : vector<8x1xf32>
    %41 = arith.mulf %27, %40 : vector<8x1xf32>
    %42 = arith.subf %21, %41 : vector<8x1xf32>
    %43 = vector.broadcast %40 : vector<8x1xf32> to vector<8x80xf32>
    %44 = arith.mulf %19, %43 : vector<8x80xf32>
    %45 = vector.broadcast %42 : vector<8x1xf32> to vector<8x80xf32>
    %46 = arith.addf %44, %45 : vector<8x80xf32>
    %cst_27 = arith.constant 0.000000e+00 : f32
    %47 = vector.broadcast %cst_27 : f32 to vector<8x80xf32>
    %48 = arith.maximumf %46, %47 : vector<8x80xf32>
    %49 = vector.broadcast %8 : vector<1x80xf32> to vector<8x80xf32>
    %50 = arith.mulf %48, %49 : vector<8x80xf32>
    %51 = tpu.concatenate %50, %18 in 0 : vector<8x80xf32>, vector<2x80xf32> -> vector<10x80xf32>
    %52 = arith.truncf %51 : vector<10x80xf32> to vector<10x80xbf16>
    %c0_28 = arith.constant 0 : index
    %c11 = arith.constant 11 : index
    %53 = vector.load %arg14[%c0_28, %c11] : memref<10x102xbf16, #tpu.memory_space<vmem>>, vector<10x80xbf16>
    tpu.vector_store %arg14[%c0_28, %c11], %52 {strides = array<i32>} : memref<10x102xbf16, #tpu.memory_space<vmem>>, vector<10x80xbf16>,
    %c0_29 = arith.constant 0 : index
    %c0_30 = arith.constant 0 : index
    %54 = vector.load %arg6[%c0_29, %c0_30] : memref<10x90xbf16, #tpu.memory_space<vmem>>, vector<10x90xbf16>
    %c0_31 = arith.constant 0 : index
    %c0_32 = arith.constant 0 : index
    %55 = vector.load %arg14[%c0_31, %c0_32] : memref<10x102xbf16, #tpu.memory_space<vmem>>, vector<10x102xbf16>
    %56 = vector.extract_strided_slice %55 {offsets = [0, 0], sizes = [10, 80], strides = [1, 1]} : vector<10x102xbf16> to vector<10x80xbf16>
    %57 = vector.extract_strided_slice %55 {offsets = [0, 1], sizes = [10, 80], strides = [1, 1]} : vector<10x102xbf16> to vector<10x80xbf16>
    %58 = vector.extract_strided_slice %55 {offsets = [0, 2], sizes = [10, 80], strides = [1, 1]} : vector<10x102xbf16> to vector<10x80xbf16>
    %59 = vector.extract_strided_slice %55 {offsets = [0, 10], sizes = [10, 80], strides = [1, 1]} : vector<10x102xbf16> to vector<10x80xbf16>
    %60 = vector.extract_strided_slice %55 {offsets = [0, 11], sizes = [10, 80], strides = [1, 1]} : vector<10x102xbf16> to vector<10x80xbf16>
    %61 = vector.extract_strided_slice %55 {offsets = [0, 12], sizes = [10, 80], strides = [1, 1]} : vector<10x102xbf16> to vector<10x80xbf16>
    %62 = vector.extract_strided_slice %55 {offsets = [0, 20], sizes = [10, 80], strides = [1, 1]} : vector<10x102xbf16> to vector<10x80xbf16>
    %63 = vector.extract_strided_slice %55 {offsets = [0, 21], sizes = [10, 80], strides = [1, 1]} : vector<10x102xbf16> to vector<10x80xbf16>
    %64 = vector.extract_strided_slice %55 {offsets = [0, 22], sizes = [10, 80], strides = [1, 1]} : vector<10x102xbf16> to vector<10x80xbf16>
    %65 = tpu.concatenate %56, %57, %58, %59, %60, %61, %62, %63, %64 in 0 : vector<10x80xbf16>, vector<10x80xbf16>, vector<10x80xbf16>, vector<10x80xbf16>, vector<10x80xbf16>, vector<10x80xbf16>, vector<10x80xbf16>, vector<10x80xbf16>, vector<10x80xbf16> -> vector<90x80xbf16>
    %cst_33 = arith.constant dense<0.000000e+00> : vector<10x80xf32>
    %66 = tpu.matmul %54, %65, %cst_33 {dimension_numbers = #tpu.dot_dimension_numbers<[1], [0], [0], [1], [0, 0, 1, 1], [], []>} : vector<10x90xbf16>, vector<90x80xbf16>, vector<10x80xf32> -> vector<10x80xf32>
    %c0_34 = arith.constant 0 : index
    %c0_35 = arith.constant 0 : index
    %67 = vector.load %arg7[%c0_34, %c0_35] : memref<10x1xf32, #tpu.memory_space<vmem>>, vector<10x1xf32>
    %c0_36 = arith.constant 0 : index
    %c0_37 = arith.constant 0 : index
    %68 = vector.load %arg8[%c0_36, %c0_37] : memref<10x1xf32, #tpu.memory_space<vmem>>, vector<10x1xf32>
    %69 = vector.broadcast %8 : vector<1x80xf32> to vector<10x80xf32>
    %70 = arith.mulf %66, %69 : vector<10x80xf32>
    %cst_38 = arith.constant dense<0.000000e+00> : vector<10xf32>
    %71 = vector.multi_reduction <add>, %70, %cst_38 [1] : vector<10x80xf32> to vector<10xf32>
    %72 = vector.shape_cast %71 : vector<10xf32> to vector<10x1xf32>
    %cst_39 = arith.constant 1.562500e-02 : f32
    %73 = vector.broadcast %cst_39 : f32 to vector<10x1xf32>
    %74 = arith.mulf %72, %73 : vector<10x1xf32>
    %75 = arith.mulf %70, %70 : vector<10x80xf32>
    %cst_40 = arith.constant dense<0.000000e+00> : vector<10xf32>
    %76 = vector.multi_reduction <add>, %75, %cst_40 [1] : vector<10x80xf32> to vector<10xf32>
    %77 = vector.shape_cast %76 : vector<10xf32> to vector<10x1xf32>
    %cst_41 = arith.constant 1.562500e-02 : f32
    %78 = vector.broadcast %cst_41 : f32 to vector<10x1xf32>
    %79 = arith.mulf %77, %78 : vector<10x1xf32>
    %80 = arith.mulf %74, %74 : vector<10x1xf32>
    %81 = arith.subf %79, %80 : vector<10x1xf32>
    %cst_42 = arith.constant 0.000000e+00 : f32
    %82 = vector.broadcast %cst_42 : f32 to vector<10x1xf32>
    %83 = arith.maximumf %81, %82 : vector<10x1xf32>
    %cst_43 = arith.constant 9.99999974E-6 : f32
    %84 = vector.broadcast %cst_43 : f32 to vector<10x1xf32>
    %85 = arith.addf %83, %84 : vector<10x1xf32>
    %86 = math.rsqrt %85 : vector<10x1xf32>
    %87 = arith.mulf %67, %86 : vector<10x1xf32>
    %88 = arith.mulf %74, %87 : vector<10x1xf32>
    %89 = arith.subf %68, %88 : vector<10x1xf32>
    %90 = vector.broadcast %87 : vector<10x1xf32> to vector<10x80xf32>
    %91 = arith.mulf %66, %90 : vector<10x80xf32>
    %92 = vector.broadcast %89 : vector<10x1xf32> to vector<10x80xf32>
    %93 = arith.addf %91, %92 : vector<10x80xf32>
    %cst_44 = arith.constant 0.000000e+00 : f32
    %94 = vector.broadcast %cst_44 : f32 to vector<10x80xf32>
    %95 = arith.maximumf %93, %94 : vector<10x80xf32>
    %96 = vector.extract_strided_slice %95 {offsets = [0, 0], sizes = [8, 80], strides = [1, 1]} : vector<10x80xf32> to vector<8x80xf32>
    %97 = vector.extract_strided_slice %95 {offsets = [8, 0], sizes = [2, 80], strides = [1, 1]} : vector<10x80xf32> to vector<2x80xf32>
    %98 = arith.addf %97, %18 : vector<2x80xf32>
    %99 = vector.broadcast %8 : vector<1x80xf32> to vector<2x80xf32>
    %100 = arith.mulf %98, %99 : vector<2x80xf32>
    %101 = arith.truncf %100 : vector<2x80xf32> to vector<2x80xbf16>
    %c0_45 = arith.constant 0 : index
    %c11_46 = arith.constant 11 : index
    %102 = vector.load %arg15[%c0_45, %c11_46] : memref<2x102xbf16, #tpu.memory_space<vmem>>, vector<2x80xbf16>
    tpu.vector_store %arg15[%c0_45, %c11_46], %101 {strides = array<i32>} : memref<2x102xbf16, #tpu.memory_space<vmem>>, vector<2x80xbf16>,
    %c0_47 = arith.constant 0 : index
    %c0_48 = arith.constant 0 : index
    %103 = vector.load %arg9[%c0_47, %c0_48] : memref<2x18xbf16, #tpu.memory_space<vmem>>, vector<2x18xbf16>
    %c0_49 = arith.constant 0 : index
    %c0_50 = arith.constant 0 : index
    %104 = vector.load %arg15[%c0_49, %c0_50] : memref<2x102xbf16, #tpu.memory_space<vmem>>, vector<2x102xbf16>
    %105 = vector.extract_strided_slice %104 {offsets = [0, 0], sizes = [2, 80], strides = [1, 1]} : vector<2x102xbf16> to vector<2x80xbf16>
    %106 = vector.extract_strided_slice %104 {offsets = [0, 1], sizes = [2, 80], strides = [1, 1]} : vector<2x102xbf16> to vector<2x80xbf16>
    %107 = vector.extract_strided_slice %104 {offsets = [0, 2], sizes = [2, 80], strides = [1, 1]} : vector<2x102xbf16> to vector<2x80xbf16>
    %108 = vector.extract_strided_slice %104 {offsets = [0, 10], sizes = [2, 80], strides = [1, 1]} : vector<2x102xbf16> to vector<2x80xbf16>
    %109 = vector.extract_strided_slice %104 {offsets = [0, 11], sizes = [2, 80], strides = [1, 1]} : vector<2x102xbf16> to vector<2x80xbf16>
    %110 = vector.extract_strided_slice %104 {offsets = [0, 12], sizes = [2, 80], strides = [1, 1]} : vector<2x102xbf16> to vector<2x80xbf16>
    %111 = vector.extract_strided_slice %104 {offsets = [0, 20], sizes = [2, 80], strides = [1, 1]} : vector<2x102xbf16> to vector<2x80xbf16>
    %112 = vector.extract_strided_slice %104 {offsets = [0, 21], sizes = [2, 80], strides = [1, 1]} : vector<2x102xbf16> to vector<2x80xbf16>
    %113 = vector.extract_strided_slice %104 {offsets = [0, 22], sizes = [2, 80], strides = [1, 1]} : vector<2x102xbf16> to vector<2x80xbf16>
    %114 = tpu.concatenate %105, %106, %107, %108, %109, %110, %111, %112, %113 in 0 : vector<2x80xbf16>, vector<2x80xbf16>, vector<2x80xbf16>, vector<2x80xbf16>, vector<2x80xbf16>, vector<2x80xbf16>, vector<2x80xbf16>, vector<2x80xbf16>, vector<2x80xbf16> -> vector<18x80xbf16>
    %cst_51 = arith.constant dense<0.000000e+00> : vector<2x80xf32>
    %115 = tpu.matmul %103, %114, %cst_51 {dimension_numbers = #tpu.dot_dimension_numbers<[1], [0], [0], [1], [0, 0, 1, 1], [], []>} : vector<2x18xbf16>, vector<18x80xbf16>, vector<2x80xf32> -> vector<2x80xf32>
    %c0_52 = arith.constant 0 : index
    %c0_53 = arith.constant 0 : index
    %116 = vector.load %arg10[%c0_52, %c0_53] : memref<2x1xf32, #tpu.memory_space<vmem>>, vector<2x1xf32>
    %c0_54 = arith.constant 0 : index
    %c0_55 = arith.constant 0 : index
    %117 = vector.load %arg11[%c0_54, %c0_55] : memref<2x1xf32, #tpu.memory_space<vmem>>, vector<2x1xf32>
    %118 = vector.broadcast %8 : vector<1x80xf32> to vector<2x80xf32>
    %119 = arith.mulf %115, %118 : vector<2x80xf32>
    %cst_56 = arith.constant dense<0.000000e+00> : vector<2xf32>
    %120 = vector.multi_reduction <add>, %119, %cst_56 [1] : vector<2x80xf32> to vector<2xf32>
    %121 = vector.shape_cast %120 : vector<2xf32> to vector<2x1xf32>
    %cst_57 = arith.constant 1.562500e-02 : f32
    %122 = vector.broadcast %cst_57 : f32 to vector<2x1xf32>
    %123 = arith.mulf %121, %122 : vector<2x1xf32>
    %124 = arith.mulf %119, %119 : vector<2x80xf32>
    %cst_58 = arith.constant dense<0.000000e+00> : vector<2xf32>
    %125 = vector.multi_reduction <add>, %124, %cst_58 [1] : vector<2x80xf32> to vector<2xf32>
    %126 = vector.shape_cast %125 : vector<2xf32> to vector<2x1xf32>
    %cst_59 = arith.constant 1.562500e-02 : f32
    %127 = vector.broadcast %cst_59 : f32 to vector<2x1xf32>
    %128 = arith.mulf %126, %127 : vector<2x1xf32>
    %129 = arith.mulf %123, %123 : vector<2x1xf32>
    %130 = arith.subf %128, %129 : vector<2x1xf32>
    %cst_60 = arith.constant 0.000000e+00 : f32
    %131 = vector.broadcast %cst_60 : f32 to vector<2x1xf32>
    %132 = arith.maximumf %130, %131 : vector<2x1xf32>
    %cst_61 = arith.constant 9.99999974E-6 : f32
    %133 = vector.broadcast %cst_61 : f32 to vector<2x1xf32>
    %134 = arith.addf %132, %133 : vector<2x1xf32>
    %135 = math.rsqrt %134 : vector<2x1xf32>
    %136 = arith.mulf %116, %135 : vector<2x1xf32>
    %137 = arith.mulf %123, %136 : vector<2x1xf32>
    %138 = arith.subf %117, %137 : vector<2x1xf32>
    %139 = vector.broadcast %136 : vector<2x1xf32> to vector<2x80xf32>
    %140 = arith.mulf %115, %139 : vector<2x80xf32>
    %141 = vector.broadcast %138 : vector<2x1xf32> to vector<2x80xf32>
    %142 = arith.addf %140, %141 : vector<2x80xf32>
    %cst_62 = arith.constant 0.000000e+00 : f32
    %143 = vector.broadcast %cst_62 : f32 to vector<2x80xf32>
    %144 = arith.maximumf %142, %143 : vector<2x80xf32>
    %145 = arith.addf %144, %98 : vector<2x80xf32>
    %146 = arith.addf %145, %18 : vector<2x80xf32>
    %c0_63 = arith.constant 0 : index
    %c0_64 = arith.constant 0 : index
    %147 = vector.load %arg12[%c0_63, %c0_64] : memref<8x2xbf16, #tpu.memory_space<vmem>>, vector<8x2xbf16>
    %148 = arith.extf %147 : vector<8x2xbf16> to vector<8x2xf32>
    %149 = arith.truncf %146 : vector<2x80xf32> to vector<2x80xbf16>
    %150 = arith.extf %149 : vector<2x80xbf16> to vector<2x80xf32>
    %151 = vector.extract_strided_slice %148 {offsets = [0, 0], sizes = [8, 1], strides = [1, 1]} : vector<8x2xf32> to vector<8x1xf32>
    %152 = vector.extract_strided_slice %150 {offsets = [0, 0], sizes = [1, 80], strides = [1, 1]} : vector<2x80xf32> to vector<1x80xf32>
    %153 = vector.broadcast %151 : vector<8x1xf32> to vector<8x80xf32>
    %154 = vector.broadcast %152 : vector<1x80xf32> to vector<8x80xf32>
    %155 = arith.mulf %153, %154 : vector<8x80xf32>
    %156 = vector.extract_strided_slice %148 {offsets = [0, 1], sizes = [8, 1], strides = [1, 1]} : vector<8x2xf32> to vector<8x1xf32>
    %157 = vector.extract_strided_slice %150 {offsets = [1, 0], sizes = [1, 80], strides = [1, 1]} : vector<2x80xf32> to vector<1x80xf32>
    %158 = vector.broadcast %156 : vector<8x1xf32> to vector<8x80xf32>
    %159 = vector.broadcast %157 : vector<1x80xf32> to vector<8x80xf32>
    %160 = arith.mulf %158, %159 : vector<8x80xf32>
    %161 = arith.addf %155, %160 : vector<8x80xf32>
    %162 = arith.mulf %161, %96 : vector<8x80xf32>
    %163 = arith.addf %162, %96 : vector<8x80xf32>
    %c0_65 = arith.constant 0 : index
    %c0_66 = arith.constant 0 : index
    %c0_67 = arith.constant 0 : index
    %164 = vector.load %arg13[%c0_65, %c0_66, %c0_67] : memref<1x8x80xf32, #tpu.memory_space<vmem>>, vector<1x8x80xf32>
    %165 = vector.shape_cast %164 : vector<1x8x80xf32> to vector<8x80xf32>
    %166 = vector.shape_cast %163 : vector<8x80xf32> to vector<1x8x80xf32>
    tpu.vector_store %arg13[%c0_65, %c0_66, %c0_67], %166 {strides = array<i32>} : memref<1x8x80xf32, #tpu.memory_space<vmem>>, vector<1x8x80xf32>,
    return
  }
  func.func @transform_0(%arg0: i32) -> (i32, i32, i32) {
    %c0_i32 = arith.constant 0 : i32
    %c0_i32_0 = arith.constant 0 : i32
    %c0_i32_1 = arith.constant 0 : i32
    return %arg0, %c0_i32, %c0_i32_0 : i32, i32, i32
  }
  func.func @transform_1(%arg0: i32) -> (i32, i32) {
    %c0_i32 = arith.constant 0 : i32
    %c0_i32_0 = arith.constant 0 : i32
    %c0_i32_1 = arith.constant 0 : i32
    return %c0_i32, %c0_i32_0 : i32, i32
  }
  func.func @transform_2(%arg0: i32) -> (i32, i32) {
    %c0_i32 = arith.constant 0 : i32
    %c0_i32_0 = arith.constant 0 : i32
    %c0_i32_1 = arith.constant 0 : i32
    return %c0_i32, %c0_i32_0 : i32, i32
  }
  func.func @transform_3(%arg0: i32) -> (i32, i32) {
    %c0_i32 = arith.constant 0 : i32
    %c0_i32_0 = arith.constant 0 : i32
    %c0_i32_1 = arith.constant 0 : i32
    return %c0_i32, %c0_i32_0 : i32, i32
  }
  func.func @transform_4(%arg0: i32) -> (i32, i32) {
    %c0_i32 = arith.constant 0 : i32
    %c0_i32_0 = arith.constant 0 : i32
    %c0_i32_1 = arith.constant 0 : i32
    return %c0_i32, %c0_i32_0 : i32, i32
  }
  func.func @transform_5(%arg0: i32) -> (i32, i32) {
    %c0_i32 = arith.constant 0 : i32
    %c0_i32_0 = arith.constant 0 : i32
    %c0_i32_1 = arith.constant 0 : i32
    return %c0_i32, %c0_i32_0 : i32, i32
  }
  func.func @transform_6(%arg0: i32) -> (i32, i32) {
    %c0_i32 = arith.constant 0 : i32
    %c0_i32_0 = arith.constant 0 : i32
    %c0_i32_1 = arith.constant 0 : i32
    return %c0_i32, %c0_i32_0 : i32, i32
  }
  func.func @transform_7(%arg0: i32) -> (i32, i32) {
    %c0_i32 = arith.constant 0 : i32
    %c0_i32_0 = arith.constant 0 : i32
    %c0_i32_1 = arith.constant 0 : i32
    return %c0_i32, %c0_i32_0 : i32, i32
  }
  func.func @transform_8(%arg0: i32) -> (i32, i32) {
    %c0_i32 = arith.constant 0 : i32
    %c0_i32_0 = arith.constant 0 : i32
    %c0_i32_1 = arith.constant 0 : i32
    return %c0_i32, %c0_i32_0 : i32, i32
  }
  func.func @transform_9(%arg0: i32) -> (i32, i32) {
    %c0_i32 = arith.constant 0 : i32
    %c0_i32_0 = arith.constant 0 : i32
    %c0_i32_1 = arith.constant 0 : i32
    return %c0_i32, %c0_i32_0 : i32, i32
  }
  func.func @transform_10(%arg0: i32) -> (i32, i32) {
    %c0_i32 = arith.constant 0 : i32
    %c0_i32_0 = arith.constant 0 : i32
    %c0_i32_1 = arith.constant 0 : i32
    return %c0_i32, %c0_i32_0 : i32, i32
  }
  func.func @transform_11(%arg0: i32) -> (i32, i32) {
    %c0_i32 = arith.constant 0 : i32
    %c0_i32_0 = arith.constant 0 : i32
    %c0_i32_1 = arith.constant 0 : i32
    return %c0_i32, %c0_i32_0 : i32, i32
  }
  func.func @transform_12(%arg0: i32) -> (i32, i32, i32) {
    %c0_i32 = arith.constant 0 : i32
    %c0_i32_0 = arith.constant 0 : i32
    %c0_i32_1 = arith.constant 0 : i32
    return %arg0, %c0_i32, %c0_i32_0 : i32, i32, i32
  }
}

</mosaic_0001>

<bundles_post_ra>
// kernel: fna_forward.1
= control target key start
LH: loop header
LB: loop body
LE: loop exit
PB: predicated region body
PF: predicated region fallthrough
CT: control target
= control target key end

     0   :  { %s1148_s21 = smov 0   ;;  %s1306_s0 = inlined_call_operand.vmem [shape: bf16[2,64,102], index: 0, kind: input, shape index: {}]   ;;  %s1307_s1 = inlined_call_operand.vmem [shape: f32[1,80], index: 1, kind: input, shape index: {}]   ;;  %s1308_s2 = inlined_call_operand.vmem [shape: bf16[10,256], index: 2, kind: input, shape index: {}]   ;;  %s1309_s3 = inlined_call_operand.vmem [shape: f32[8,1], index: 3, kind: input, shape index: {}]   ;;  %s1310_s4 = inlined_call_operand.vmem [shape: f32[8,1], index: 4, kind: input, shape index: {}]   ;;  %s1311_s5 = inlined_call_operand.vmem [shape: bf16[10,90], index: 5, kind: input, shape index: {}]   ;;  %s1312_s6 = inlined_call_operand.vmem [shape: f32[10,1], index: 6, kind: input, shape index: {}]   ;;  %s1313_s7 = inlined_call_operand.vmem [shape: f32[10,1], index: 7, kind: input, shape index: {}]   ;;  %s1314_s8 = inlined_call_operand.vmem [shape: bf16[2,18], index: 8, kind: input, shape index: {}]   ;;  %s1315_s9 = inlined_call_operand.vmem [shape: f32[2,1], index: 9, kind: input, shape index: {}]   ;;  %s1316_s10 = inlined_call_operand.vmem [shape: f32[2,1], index: 10, kind: input, shape index: {}]   ;;  %s1317_s11 = inlined_call_operand.vmem [shape: bf16[8,2], index: 11, kind: input, shape index: {}]   ;;  %s1318_s12 = inlined_call_operand.vmem [shape: f32[2,8,80], index: 12, kind: output, shape index: {}]  }
   0x1 LB: > { %s983_s22 = sadd.s32 4294967295, %s1070_s21   ;;  %p987_p0 = scmp.ge.s32.totalorder %s1070_s21, 1  ;;  %s1070_s21 = sphi %s1148_s21, %s22_s21  }
   0x2   : > { %p362_p1 = scmp.lt.s32.totalorder %s1070_s21, 3 }
   0x4   : > { %p363_p2 = pnand %p987_p0, %p362_p1 }
   0x5   : > { %p403_p3 = scmp.lt.s32.totalorder (!%p363_p2), %s983_s22, 1  ;;  %s1072_s27 = smov (!%p363_p2), 127  }
   0x6   : > { %366 = sbr.rel (%p363_p2) target bundleno = 1948 (0x79c), region = 68  ;;  %s1073_s28 = smov (!%p363_p2), 117  }
   0x7   : > { %s1074_s29 = smov (!%p363_p2), 118   ;;  %s1076_s13 = smov (!%p363_p2), 11  }
   0x8   : > { %s1077_s14 = smov (!%p363_p2), 106   ;;  %s1078_s15 = smov (!%p363_p2), 107  }
   0x9   : > { %s1079_s16 = smov (!%p363_p2), 108   ;;  %s1080_s17 = smov (!%p363_p2), 126  }
   0xa   : > { %s1081_s18 = smov (!%p363_p2), 116  }
   0xb   : > { %s1320_s22 = smov (!%p403_p3, %s983_s22), 1  ;;  %v1009_v14 = vld [vmem:[%s1308_s2] sm:$0xf]  ;;  %v1029_v15 = vld [vmem:[%s1308_s2 + $0x4] sm:$0x10]  ;;  %vm538_vm0 = vcmask 654336  }
   0xc   : > { %s1023_s23 = sshll.u32 %s1320_s22, 5  ;;  %v1010_v17 = vor.u32 %v1029_v15, %v1009_v14  ;;  %v1028_v18 = vld [vmem:[%s1308_s2 + $0x4] sm:$0xf]  ;;  %v1011_v19 = vld [vmem:[%s1308_s2 + $0x8] sm:$0x10]  ;;  %v1075_v30 = vmov 0  }
   0xd   : > { %s407_s26 = scalar_lea.vmem %s1306_s0, %s1023_s23  ;;  %v1014_v21 = vor.u32 %v1028_v18, %v1011_v19  ;;  %v1189_v22 = vld [vmem:[%s1307_s1] ss:$0 sm:$0xff]  ;;  %1050 = vset.pattern.permute.xlu2 %v1075_v30  ;;  %1051 = vset.pattern.permute.xlu1 %v1075_v30  ;;  %vm413_vm4 = vcmask 84992   ;;  %vm417_vm5 = vcmask 831192   ;;  %vm415_vm6 = vcmask 81920   ;;  %s990_s25 = sshll.u32 %s1320_s22, 3 }
   0xe   : > { %v1027_v0 = vld [vmem:[%s407_s26 + $0x18] sm:$0xff]  ;;  %v1026_v1 = vld [vmem:[%s407_s26 + $0x10] sm:$0xff]  ;;  %v1025_v2 = vld [vmem:[%s407_s26 + $0x8] sm:$0xff]  ;;  %1052 = vset.pattern.permute.xlu0 %v1075_v30  ;;  %414 = vst.msk [vmem:[#allocation2] sm:$0xf] %vm413_vm4, %v1075_v30  ;;  %vm419_vm7 = vcmask 828120   ;;  %s411_s19 = scalar_lea.vmem %s1318_s12, %s990_s25 }
   0xf   : > { %464 = vrot.lane.b32.xlu0 %v1027_v0, %s1072_s27  ;;  %462 = vrot.lane.b32.xlu1 %v1026_v1, %s1072_s27  ;;  %v1024_v3 = vld [vmem:[%s407_s26] sm:$0xff]  ;;  %418 = vst.msk [vmem:[#allocation2] sm:$0xf] %vm417_vm5, %v1075_v30  ;;  %vm589_vm8 = vcmask 740440   ;;  %vm591_vm9 = vcmask 737368   ;;  %vm628_vm10 = vcmask 1044480  }
  0x10   : > { %460 = vrot.lane.b32.xlu2 %v1025_v2, %s1072_s27  ;;  %v532_v44 = vld [vmem:[%s1309_s3] sm:$0xff]  ;;  %416 = vst.msk [vmem:[#allocation2 + $0x4] sm:$0x1] %vm415_vm6, %v1075_v30  ;;  %vm652_vm11 = vcmask 1042432   ;;  %vm644_vm12 = vcmask 1040384   ;;  %vm648_vm13 = vcmask 1045504  }
  0x11   : > { %v533_v49 = vld [vmem:[%s1310_s4] sm:$0xff]  ;;  %420 = vst.msk [vmem:[#allocation2 + $0x4] sm:$0x1] %vm419_vm7, %v1075_v30  ;;  %vm640_vm14 = vcmask 1043456   ;;  %vm633_vm15 = vcmask 1041408  }
  0x12   : > { %421 = vst.msk [vmem:[#allocation3] sm:$0x1] %vm415_vm6, %v1075_v30 }
  0x13   : > { %422 = vst.msk [vmem:[#allocation3] sm:$0x1] %vm419_vm7, %v1075_v30  ;;  %v1017_v30 = vld [vmem:[%s1311_s5] sm:$0xf]  ;;  %vm845_vm7 = vcmask 146432  }
  0x17   : > { %488 = vrot.lane.b32.xlu0 %v1027_v0, %s1073_s28  ;;  %486 = vrot.lane.b32.xlu1 %v1026_v1, %s1073_s28 }
  0x18   : > { %484 = vrot.lane.b32.xlu2 %v1025_v2, %s1073_s28 }
  0x1f   : > { %458 = vrot.lane.b32.xlu0 %v1024_v3, %s1072_s27  ;;  %482 = vrot.lane.b32.xlu1 %v1024_v3, %s1073_s28 }
  0x20   : > { %476 = vrot.lane.b32.xlu2 %v1027_v0, %s1074_s29 }
  0x27   : > { %474 = vrot.lane.b32.xlu0 %v1026_v1, %s1074_s29  ;;  %472 = vrot.lane.b32.xlu1 %v1025_v2, %s1074_s29 }
  0x28   : > { %470 = vrot.lane.b32.xlu2 %v1024_v3, %s1074_s29 }
  0x6a   : > { %v461_v6 = vpop.permute.xlu2 %460 }
  0x72   : > { %v485_v9 = vpop.permute.xlu2 %484 }
  0x7a   : > { %v477_v12 = vpop.permute.xlu2 %476 }
  0x81   : > { %v465_v4 = vpop.permute.xlu0 %464  ;;  %v463_v5 = vpop.permute.xlu1 %462 }
  0x82   : > { %504 = vmatpush.bf16.msra.mxu0 %v465_v4  ;;  %v471_v20 = vpop.permute.xlu2 %470 }
  0x86   : > { %505 = vmatpush.bf16.msra.mxu0 %v463_v5 }
  0x89   : > { %v489_v7 = vpop.permute.xlu0 %488  ;;  %v487_v8 = vpop.permute.xlu1 %486 }
  0x8a   : > { %506 = vmatpush.bf16.msra.mxu0 %v461_v6  ;;  %518 = vmatpush.bf16.msra.mxu1 %v489_v7 }
  0x8e   : > { %519 = vmatpush.bf16.msra.mxu1 %v487_v8 }
  0x91   : > { %v459_v10 = vpop.permute.xlu0 %458  ;;  %v483_v11 = vpop.permute.xlu1 %482 }
  0x92   : > { %507 = vmatpush.bf16.msra.mxu0 %v459_v10  ;;  %520 = vmatpush.bf16.msra.mxu1 %v485_v9 }
  0x96   : > { %508 = vmatpush.bf16.msra.mxu0 %v1027_v0  ;;  %521 = vmatpush.bf16.msra.mxu1 %v483_v11 }
  0x99   : > { %v475_v13 = vpop.permute.xlu0 %474  ;;  %v473_v16 = vpop.permute.xlu1 %472 }
  0x9a   : > { %509 = vmatpush.bf16.msra.mxu0 %v1026_v1  ;;  %522 = vmatpush.bf16.msra.mxu1 %v477_v12 }
  0x9e   : > { %510 = vmatpush.bf16.msra.mxu0 %v1025_v2  ;;  %523 = vmatpush.bf16.msra.mxu1 %v475_v13 }
  0xa2   : > { %511 = vmatpush.bf16.msra.mxu0 %v1024_v3  ;;  %524 = vmatpush.bf16.msra.mxu1 %v473_v16 }
  0xa5   : > { %512 = vmatmul.bf16.vlgmr.msra.gmra.mxu0 %v1010_v17 }
  0xa6   : > { %525 = vmatpush.bf16.msra.mxu1 %v471_v20 }
  0xa9   : > { %526 = vmatmul.bf16.vlgmr.msra.gmra.mxu1 %v1014_v21 }
 0x122   : > { %v513_v23 = vpop.f32.mrf.mxu0 }
 0x126   : > { %v527_v24 = vpop.f32.mrf.mxu1 }
 0x127   : > { %v528_v25 = vadd.f32 %v527_v24, %v513_v23 }
 0x129   : > { %v537_v26 = vmul.f32 %v1189_v22, %v528_v25 }
 0x12a   : > { %v515_v59 = vpop.f32.mrf.mxu0 }
 0x12b   : > { %v539_v27 = vsel %vm538_vm0, %v537_v26, 0.0  ;;  %v543_v28 = vmul.f32 %v537_v26, %v537_v26 }
 0x12c   : > { %540 = vadd.xlane.f32.xlu0 %v539_v27 }
 0x12d   : > { %v544_v29 = vsel %vm538_vm0, %v543_v28, 0.0 }
 0x12e   : > { %545 = vadd.xlane.f32.xlu1 %v544_v29  ;;  %v529_v58 = vpop.f32.mrf.mxu1 }
 0x12f   : > { %v1202_v60 = vadd.f32 %v529_v58, %v515_v59  ;;  %v685_v58 = vld [vmem:[%s1313_s7 + $0x8] sm:$0x3] }
 0x131   : > { %v580_v61 = vpack.c.bf16 %v1202_v60, %v1202_v60 }
 0x19f   : > { %v541_v31 = vpop.xlane.xlu0 %540 }
 0x1a0   : > { %v542_v32 = vmul.f32 0.015625, %v541_v31  ;;  %v1030_v31 = vld [vmem:[%s1311_s5] sm:$0x10] }
 0x1a1   : > { %v546_v33 = vpop.xlane.xlu1 %545 }
 0x1a2   : > { %v548_v34 = vmul.f32 %v542_v32, %v542_v32  ;;  %v547_v35 = vmul.f32 0.015625, %v546_v33  ;;  %v1018_v33 = vor.u32 %v1030_v31, %v1017_v30 }
 0x1a4   : > { %v549_v36 = vsub.f32 %v547_v35, %v548_v34 }
 0x1a6   : > { %v550_v37 = vmax.f32 %v549_v36, 0.0 }
 0x1a8   : > { %v551_v38 = vadd.f32 1e-05, %v550_v37 }
 0x1aa   : > { %1056 = vrsqrt.f32 %v551_v38  ;;  %vm558_vm2 = vweird.f32 %v551_v38 }
 0x1b0   : > { %v1057_v39 = vpop.eup %1056 }
 0x1b1   : > { %v553_v40 = vmul.f32 %v1057_v39, %v551_v38  ;;  %vm559_vm1 = vweird.f32 %v1057_v39 }
 0x1b2   : > { %vm560_vm3 = vmor %vm558_vm2, %vm559_vm1  ;;  %vm636_vm1 = vcmask 1046528   ;;  %vm661_vm2 = vcmask 736256  }
 0x1b3   : > { %v554_v41 = vmul.f32 %v1057_v39, %v553_v40 }
 0x1b5   : > { %v555_v42 = vmul.f32 0.5, %v554_v41 }
 0x1b7   : > { %v556_v43 = vsub.f32 1.5, %v555_v42 }
 0x1b9   : > { %v557_v45 = vmul.f32 %v1057_v39, %v556_v43 }
 0x1bb   : > { %v561_v46 = vsel %vm560_vm3, %v1057_v39, %v557_v45  ;;  %vm691_vm3 = vcmask 648192  }
 0x1bc   : > { %v562_v47 = vmul.f32 %v561_v46, %v532_v44 }
 0x1be   : > { %567 = vperm.xlu2 %1050, %v562_v47   ;;  %v563_v48 = vmul.f32 %v562_v47, %v542_v32 }
 0x1c0   : > { %v564_v50 = vsub.f32 %v533_v49, %v563_v48 }
 0x1c6   : > { %573 = vperm.xlu2 %1050, %v564_v50  }
 0x218   : > { %v568_v51 = vpop.permute.xlu2 %567 }
 0x219   : > { %v570_v52 = vmul.f32 %v568_v51, %v528_v25 }
 0x220   : > { %v574_v53 = vpop.permute.xlu2 %573 }
 0x221   : > { %v576_v54 = vadd.f32 %v574_v53, %v570_v52  ;;  %v683_v53 = vld [vmem:[%s1312_s6 + $0x8] sm:$0x3] }
 0x223   : > { %v577_v55 = vmax.f32 %v576_v54, 0.0 }
 0x225   : > { %v578_v56 = vmul.f32 %v1189_v22, %v577_v55 }
 0x227   : > { %v579_v57 = vpack.c.bf16 %v578_v56, %v578_v56 }
 0x229   : > { %583 = vrot.lane.b32.xlu2 %v579_v57, %s1076_s13 }
 0x231   : > { %585 = vrot.lane.b32.xlu2 %v580_v61, %s1076_s13 }
 0x283   : > { %v584_v62 = vpop.permute.xlu2 %583 }
 0x284   : > { %590 = vst.msk [vmem:[#allocation2] sm:$0xf] %vm589_vm8, %v584_v62 }
 0x28b   : > { %v586_v63 = vpop.permute.xlu2 %585  ;;  %v595_v0 = vld [vmem:[#allocation2] sm:$0xf] }
 0x28c   : > { %592 = vst.msk [vmem:[#allocation2 + $0x4] sm:$0x1] %vm591_vm9, %v586_v63  ;;  %v599_v2 = vunpack.c.l.b16 %v595_v0 }
 0x28e   : > { %v611_v9 = vpack.c.b16 %v599_v2, %v599_v2 }
 0x293   : > { %v596_v1 = vld [vmem:[#allocation2 + $0x4] sm:$0x1] }
 0x294   : > { %v600_v3 = vunpack.c.l.b16 %v596_v1 }
 0x296   : > { %v612_v4 = vpack.c.b16 %v600_v3, %v600_v3  ;;  %v601_v5 = vpack.c.b16 %v600_v3, %v599_v2 }
 0x298   : > { %615 = vrot.lane.b32.xlu1 %v612_v4, %s1073_s28  ;;  %626 = vrot.lane.b32.xlu2 %v601_v5, %s1077_s14  ;;  %v623_v6 = vrot.slane %v601_v5, 5  ;;  %v620_v7 = vrot.slane %v601_v5, 2  ;;  %v605_v8 = vrot.slane %v601_v5, 6  ;;  %v617_v10 = vrot.slane %v601_v5, 7 }
 0x299   : > { %v608_v11 = vrot.slane %v601_v5, 1  ;;  %v602_v12 = vrot.slane %v601_v5, 3 }
 0x29a   : > { %624 = vrot.lane.b32.xlu0 %v623_v6, %s1078_s15 }
 0x2a0   : > { %621 = vrot.lane.b32.xlu2 %v620_v7, %s1079_s16  ;;  %606 = vrot.lane.b32.xlu1 %v605_v8, %s1080_s17 }
 0x2a2   : > { %613 = vrot.lane.b32.xlu0 %v611_v9, %s1073_s28 }
 0x2a8   : > { %618 = vrot.lane.b32.xlu2 %v617_v10, %s1081_s18 }
 0x2b0   : > { %609 = vrot.lane.b32.xlu2 %v608_v11, %s1074_s29 }
 0x2b8   : > { %603 = vrot.lane.b32.xlu2 %v602_v12, %s1072_s27 }
 0x2f2   : > { %v627_v13 = vpop.permute.xlu2 %626 }
 0x2f3   : > { %v666_v14 = vsel %vm628_vm10, %v627_v13, 0 }
 0x2f4   : > { %670 = vmatpush.bf16.msra.mxu2 %v666_v14 }
 0x2fa   : > { %v622_v15 = vpop.permute.xlu2 %621 }
 0x302   : > { %v619_v16 = vpop.permute.xlu2 %618 }
 0x30a   : > { %v616_v17 = vpop.permute.xlu1 %615  ;;  %v610_v18 = vpop.permute.xlu2 %609 }
 0x30b   : > { %v647_v21 = vsel %vm644_vm12, %v616_v17, %v619_v16 }
 0x30c   : > { %v625_v19 = vpop.permute.xlu0 %624  ;;  %v650_v23 = vsel %vm648_vm13, %v647_v21, %v622_v15 }
 0x30d   : > { %v654_v20 = vsel %vm652_vm11, %v622_v15, %v625_v19 }
 0x30e   : > { %671 = vmatpush.bf16.msra.mxu2 %v654_v20 }
 0x312   : > { %672 = vmatpush.bf16.msra.mxu2 %v650_v23  ;;  %v607_v24 = vpop.permute.xlu1 %606  ;;  %v604_v25 = vpop.permute.xlu2 %603 }
 0x313   : > { %v635_v28 = vsel %vm633_vm15, %v604_v25, %v607_v24  ;;  %v631_v32 = vsel %vm628_vm10, %v601_v5, %v604_v25 }
 0x314   : > { %v614_v26 = vpop.permute.xlu0 %613  ;;  %v638_v29 = vsel %vm636_vm1, %v635_v28, %v610_v18 }
 0x315   : > { %v642_v27 = vsel %vm640_vm14, %v610_v18, %v614_v26 }
 0x316   : > { %673 = vmatpush.bf16.msra.mxu2 %v642_v27 }
 0x31a   : > { %674 = vmatpush.bf16.msra.mxu2 %v638_v29 }
 0x31e   : > { %675 = vmatpush.bf16.msra.mxu2 %v631_v32 }
 0x321   : > { %1019 = vmatmul.msk.bf16.vlgmr.msra.gmra.mxu2 %vm661_vm2, %v1018_v33 }
 0x3a4   : > { %v1231_v34 = vpop.f32.mrf.mxu2 }
 0x3a5   : > { %v686_v17 = vmul.f32 %v1189_v22, %v1231_v34 }
 0x3a7   : > { %v688_v18 = vsel %vm538_vm0, %v686_v17, 0.0 }
 0x3ac   : > { %v679_v35 = vpop.f32.mrf.mxu2 }
 0x3ad   : > { %v687_v36 = vmul.f32 %v1189_v22, %v679_v35 }
 0x3af   : > { %v692_v37 = vsel %vm691_vm3, %v687_v36, 0.0  ;;  %v698_v38 = vmul.f32 %v687_v36, %v687_v36 }
 0x3b0   : > { %693 = vadd.xlane.f32.xlu0 %v692_v37  ;;  %v780_v37 = vld [vmem:[%s1314_s8] sm:$0x1] }
 0x3b1   : > { %v702_v39 = vsel %vm691_vm3, %v698_v38, 0.0 }
 0x3b2   : > { %703 = vadd.xlane.f32.xlu2 %v702_v39 }
 0x423   : > { %v694_v40 = vpop.xlane.xlu0 %693 }
 0x424   : > { %v696_v41 = vmul.f32 0.015625, %v694_v40 }
 0x425   : > { %v704_v42 = vpop.xlane.xlu2 %703 }
 0x426   : > { %v708_v43 = vmul.f32 %v696_v41, %v696_v41  ;;  %v706_v44 = vmul.f32 0.015625, %v704_v42 }
 0x428   : > { %v710_v45 = vsub.f32 %v706_v44, %v708_v43  ;;  %v697_v43 = vmul.f32 %v686_v17, %v686_v17 }
 0x42a   : > { %v712_v46 = vmax.f32 %v710_v45, 0.0  ;;  %v699_v45 = vsel %vm538_vm0, %v697_v43, 0.0 }
 0x42c   : > { %v714_v47 = vadd.f32 1e-05, %v712_v46 }
 0x42e   : > { %1058 = vrsqrt.f32 %v714_v47  ;;  %vm731_vm5 = vweird.f32 %v714_v47 }
 0x434   : > { %v1059_v48 = vpop.eup %1058 }
 0x435   : > { %v726_v49 = vmul.f32 %v1059_v48, %v714_v47  ;;  %vm732_vm4 = vweird.f32 %v1059_v48 }
 0x436   : > { %vm733_vm6 = vmor %vm731_vm5, %vm732_vm4 }
 0x437   : > { %v727_v50 = vmul.f32 %v1059_v48, %v726_v49 }
 0x439   : > { %v728_v51 = vmul.f32 0.5, %v727_v50 }
 0x43b   : > { %v729_v52 = vsub.f32 1.5, %v728_v51 }
 0x43d   : > { %v730_v54 = vmul.f32 %v1059_v48, %v729_v52 }
 0x43f   : > { %v734_v55 = vsel %vm733_vm6, %v1059_v48, %v730_v54 }
 0x440   : > { %v736_v56 = vmul.f32 %v734_v55, %v683_v53 }
 0x442   : > { %748 = vperm.xlu1 %1051, %v736_v56   ;;  %v738_v57 = vmul.f32 %v736_v56, %v696_v41 }
 0x444   : > { %v740_v59 = vsub.f32 %v685_v58, %v738_v57 }
 0x44a   : > { %760 = vperm.xlu1 %1051, %v740_v59  }
 0x4b4   : > { %v749_v61 = vpop.permute.xlu1 %748 }
 0x4b5   : > { %v752_v62 = vmul.f32 %v749_v61, %v679_v35 }
 0x4bc   : > { %v761_v63 = vpop.permute.xlu1 %760 }
 0x4bd   : > { %v764_v0 = vadd.f32 %v761_v63, %v752_v62 }
 0x4bf   : > { %v766_v1 = vmax.f32 %v764_v0, 0.0 }
 0x4c1   : > { %v1243_v2 = vadd.f32 %v766_v1, %v1202_v60 }
 0x4c3   : > { %v768_v3 = vmul.f32 %v1189_v22, %v1243_v2 }
 0x4c5   : > { %v769_v4 = vpack.c.bf16 %v768_v3, %v768_v3 }
 0x4c7   : > { %v771_v5 = vrot.slane %v769_v4, 3 }
 0x4c9   : > { %v774_v6 = vsel %vm644_vm12, %v769_v4, %v771_v5 }
 0x4ca   : > { %776 = vrot.lane.b32.xlu1 %v774_v6, %s1076_s13 }
 0x53c   : > { %v777_v7 = vpop.permute.xlu1 %776 }
 0x53d   : > { %779 = vst.msk [vmem:[#allocation3] sm:$0x1] %vm591_vm9, %v777_v7  ;;  %v865_v7 = vld [vmem:[%s1315_s9] sm:$0x3] }
 0x544   : > { %v781_v8 = vld [vmem:[#allocation3] sm:$0x1] }
 0x545   : > { %784 = vst [vmem:[#allocation1 + $0x1] ss:$9 sm:$0xff] %v781_v8 }
 0x54c   : > { %v785_v9 = vld [vmem:[#allocation1] sm:$0xff] }
 0x54d   : > { %787 = vrot.lane.b32.xlu1 %v785_v9, %s1072_s27  ;;  %790 = vst [vmem:[#allocation1 + $0x2] ss:$9 sm:$0xff] %v781_v8 }
 0x554   : > { %v791_v10 = vld [vmem:[#allocation1] sm:$0xff] }
 0x555   : > { %793 = vrot.lane.b32.xlu1 %v791_v10, %s1080_s17  ;;  %796 = vst [vmem:[#allocation1 + $0x3] ss:$9 sm:$0xff] %v781_v8 }
 0x55c   : > { %v797_v11 = vld [vmem:[#allocation1] sm:$0xff] }
 0x55d   : > { %799 = vrot.lane.b32.xlu0 %v797_v11, %s1074_s29  ;;  %802 = vst [vmem:[#allocation1 + $0x4] ss:$9 sm:$0xff] %v781_v8 }
 0x564   : > { %v803_v12 = vld [vmem:[#allocation1] sm:$0xff] }
 0x565   : > { %805 = vrot.lane.b32.xlu1 %v803_v12, %s1073_s28  ;;  %808 = vst [vmem:[#allocation1 + $0x5] ss:$9 sm:$0xff] %v781_v8 }
 0x56c   : > { %v809_v13 = vld [vmem:[#allocation1] sm:$0xff] }
 0x56d   : > { %811 = vrot.lane.b32.xlu1 %v809_v13, %s1081_s18  ;;  %814 = vst [vmem:[#allocation1 + $0x6] ss:$9 sm:$0xff] %v781_v8  ;;  %v866_v13 = vld [vmem:[%s1316_s10] sm:$0x3] }
 0x574   : > { %v815_v14 = vld [vmem:[#allocation1] sm:$0xff] }
 0x575   : > { %817 = vrot.lane.b32.xlu1 %v815_v14, %s1079_s16  ;;  %820 = vst [vmem:[#allocation1 + $0x7] ss:$9 sm:$0xff] %v781_v8 }
 0x57c   : > { %v821_v15 = vld [vmem:[#allocation1] sm:$0xff] }
 0x57d   : > { %823 = vrot.lane.b32.xlu0 %v821_v15, %s1078_s15  ;;  %825 = vst [vmem:[#allocation1] ss:$9 sm:$0xff] %v781_v8  ;;  %v682_v15 = vld [vmem:[%s1312_s6] sm:$0xff] }
 0x584   : > { %v826_v16 = vld [vmem:[#allocation1] sm:$0xff] }
 0x585   : > { %828 = vrot.lane.b32.xlu2 %v826_v16, %s1077_s14 }
 0x5a7   : > { %689 = vadd.xlane.f32.xlu0 %v688_v18 }
 0x5bf   : > { %v788_v19 = vpop.permute.xlu1 %787 }
 0x5c0   : > { %v831_v27 = vsel %vm644_vm12, %v781_v8, %v788_v19 }
 0x5c7   : > { %v794_v20 = vpop.permute.xlu1 %793 }
 0x5c8   : > { %v833_v28 = vsel %vm633_vm15, %v831_v27, %v794_v20  ;;  %v684_v20 = vld [vmem:[%s1313_s7] sm:$0xff] }
 0x5cf   : > { %v800_v26 = vpop.permute.xlu0 %799 }
 0x5d0   : > { %v835_v29 = vsel %vm652_vm11, %v833_v28, %v800_v26  ;;  %v1082_v26 = vmov 1  }
 0x5d7   : > { %v806_v21 = vpop.permute.xlu1 %805 }
 0x5d8   : > { %v837_v31 = vsel %vm640_vm14, %v835_v29, %v806_v21 }
 0x5df   : > { %v829_v23 = vpop.permute.xlu2 %828  ;;  %v812_v25 = vpop.permute.xlu1 %811 }
 0x5e0   : > { %v850_v24 = vsel %vm644_vm12, %v829_v23, 0  ;;  %v839_v32 = vsel %vm628_vm10, %v837_v31, %v812_v25  ;;  %v909_v23 = vld [vmem:[%s1317_s11] sm:$0xf] }
 0x5e1   : > { %858 = vmatpush.bf16.msra.mxu3 %v850_v24  ;;  %v910_v25 = vunpack.c.l.bf16 %v909_v23 }
 0x5e7   : > { %v818_v30 = vpop.permute.xlu1 %817 }
 0x5e8   : > { %v841_v33 = vsel %vm648_vm13, %v839_v32, %v818_v30 }
 0x5ef   : > { %v824_v35 = vpop.permute.xlu0 %823 }
 0x5f0   : > { %v843_v36 = vsel %vm636_vm1, %v841_v33, %v824_v35 }
 0x5f1   : > { %859 = vmatpush.bf16.msra.mxu3 %v843_v36 }
 0x5f4   : > { %1020 = vmatmul.msk.bf16.vlgmr.msra.gmra.mxu3 %vm845_vm7, %v780_v37 }
 0x61a   : > { %v690_v48 = vpop.xlane.xlu0 %689 }
 0x61b   : > { %v695_v52 = vmul.f32 0.015625, %v690_v48 }
 0x61d   : > { %v707_v55 = vmul.f32 %v695_v52, %v695_v52 }
 0x677   : > { %v1272_v38 = vpop.f32.mrf.mxu3 }
 0x678   : > { %v867_v39 = vmul.f32 %v1189_v22, %v1272_v38 }
 0x67a   : > { %v868_v40 = vsel %vm691_vm3, %v867_v39, 0.0  ;;  %v872_v41 = vmul.f32 %v867_v39, %v867_v39 }
 0x67b   : > { %869 = vadd.xlane.f32.xlu2 %v868_v40 }
 0x67c   : > { %v873_v42 = vsel %vm691_vm3, %v872_v41, 0.0 }
 0x67d   : > { %874 = vadd.xlane.f32.xlu1 %v873_v42 }
 0x67f   : > { %v863_v44 = vpop.f32.mrf.mxu3 }
 0x683   : > { %700 = vadd.xlane.f32.xlu2 %v699_v45 }
 0x6ee   : > { %v870_v46 = vpop.xlane.xlu2 %869 }
 0x6ef   : > { %v871_v47 = vmul.f32 0.015625, %v870_v46 }
 0x6f0   : > { %v875_v49 = vpop.xlane.xlu1 %874 }
 0x6f1   : > { %v877_v50 = vmul.f32 %v871_v47, %v871_v47  ;;  %v876_v51 = vmul.f32 0.015625, %v875_v49 }
 0x6f3   : > { %v878_v22 = vsub.f32 %v876_v51, %v877_v50 }
 0x6f5   : > { %v879_v53 = vmax.f32 %v878_v22, 0.0 }
 0x6f6   : > { %v701_v54 = vpop.xlane.xlu2 %700 }
 0x6f7   : > { %v880_v56 = vadd.f32 1e-05, %v879_v53  ;;  %v705_v57 = vmul.f32 0.015625, %v701_v54 }
 0x6f9   : > { %1060 = vrsqrt.f32 %v880_v56  ;;  %v709_v58 = vsub.f32 %v705_v57, %v707_v55  ;;  %vm887_vm9 = vweird.f32 %v880_v56 }
 0x6fb   : > { %v711_v59 = vmax.f32 %v709_v58, 0.0 }
 0x6fd   : > { %v713_v61 = vadd.f32 1e-05, %v711_v59 }
 0x6ff   : > { %v1061_v62 = vpop.eup %1060  ;;  %1062 = vrsqrt.f32 %v713_v61  ;;  %vm721_vm12 = vweird.f32 %v713_v61 }
 0x700   : > { %v882_v63 = vmul.f32 %v1061_v62, %v880_v56  ;;  %vm888_vm8 = vweird.f32 %v1061_v62 }
 0x701   : > { %vm889_vm10 = vmor %vm887_vm9, %vm888_vm8 }
 0x702   : > { %v883_v0 = vmul.f32 %v1061_v62, %v882_v63 }
 0x704   : > { %v884_v1 = vmul.f32 0.5, %v883_v0 }
 0x705   : > { %v1063_v3 = vpop.eup %1062 }
 0x706   : > { %v885_v4 = vsub.f32 1.5, %v884_v1  ;;  %v716_v5 = vmul.f32 %v1063_v3, %v713_v61  ;;  %vm722_vm11 = vweird.f32 %v1063_v3 }
 0x707   : > { %vm723_vm13 = vmor %vm721_vm12, %vm722_vm11 }
 0x708   : > { %v717_v6 = vmul.f32 %v1063_v3, %v716_v5  ;;  %v886_v8 = vmul.f32 %v1061_v62, %v885_v4 }
 0x70a   : > { %v718_v9 = vmul.f32 0.5, %v717_v6  ;;  %v890_v10 = vsel %vm889_vm10, %v1061_v62, %v886_v8 }
 0x70b   : > { %v891_v11 = vmul.f32 %v890_v10, %v865_v7 }
 0x70c   : > { %v719_v12 = vsub.f32 1.5, %v718_v9 }
 0x70d   : > { %896 = vperm.xlu1 %1051, %v891_v11   ;;  %v892_v14 = vmul.f32 %v891_v11, %v871_v47 }
 0x70e   : > { %v720_v16 = vmul.f32 %v1063_v3, %v719_v12 }
 0x70f   : > { %v893_v17 = vsub.f32 %v866_v13, %v892_v14 }
 0x710   : > { %v724_v18 = vsel %vm723_vm13, %v1063_v3, %v720_v16 }
 0x711   : > { %902 = vperm.xlu0 %1052, %v893_v17   ;;  %v735_v19 = vmul.f32 %v724_v18, %v682_v15 }
 0x713   : > { %743 = vperm.xlu2 %1050, %v735_v19   ;;  %v737_v21 = vmul.f32 %v735_v19, %v695_v52 }
 0x715   : > { %v739_v24 = vsub.f32 %v684_v20, %v737_v21 }
 0x717   : > { %755 = vperm.xlu1 %1051, %v739_v24  }
 0x719   : > { %1054 = vset.pattern.permute.xlu0 %v1082_v26 }
 0x71b   : > { %915 = vperm.xlu2 %1050, %v910_v25  }
 0x71f   : > { %1053 = vset.pattern.permute.xlu1 %v1082_v26 }
 0x720   : > { %921 = vperm.xlu1 %1053, %v910_v25  }
 0x76d   : > { %v744_v32 = vpop.permute.xlu2 %743 }
 0x76e   : > { %v751_v40 = vmul.f32 %v744_v32, %v1231_v34 }
 0x775   : > { %v916_v43 = vpop.permute.xlu2 %915 }
 0x77f   : > { %v897_v27 = vpop.permute.xlu1 %896 }
 0x780   : > { %v899_v28 = vmul.f32 %v897_v27, %v1272_v38 }
 0x783   : > { %v903_v29 = vpop.permute.xlu0 %902 }
 0x784   : > { %v905_v30 = vadd.f32 %v903_v29, %v899_v28 }
 0x786   : > { %v906_v31 = vmax.f32 %v905_v30, 0.0 }
 0x788   : > { %v907_v33 = vadd.f32 %v906_v31, %v1243_v2 }
 0x789   : > { %v756_v35 = vpop.permute.xlu1 %755 }
 0x78a   : > { %v908_v36 = vadd.f32 %v907_v33, %v1202_v60  ;;  %v763_v44 = vadd.f32 %v756_v35, %v751_v40 }
 0x78c   : > { %v911_v37 = vpack.c.bf16 %v908_v36, %v908_v36  ;;  %v765_v47 = vmax.f32 %v763_v44, 0.0 }
 0x78e   : > { %v912_v39 = vunpack.c.l.bf16 %v911_v37 }
 0x790   : > { %v918_v41 = vperm.slane %v912_v39, 0  ;;  %v924_v42 = vperm.slane %v912_v39, 1 }
 0x792   : > { %v919_v45 = vmul.f32 %v918_v41, %v916_v43  ;;  %v922_v38 = vpop.permute.xlu1 %921 }
 0x793   : > { %v925_v46 = vmul.f32 %v924_v42, %v922_v38 }
 0x795   : > { %v926_v48 = vadd.f32 %v925_v46, %v919_v45 }
 0x797   : > { %v927_v49 = vmul.f32 %v926_v48, %v765_v47 }
 0x799   : > { %v928_v60 = vadd.f32 %v927_v49, %v765_v47 }
 0x79b   : > { %929 = vst.msk [vmem:[%s411_s19] sm:$0xff] %vm538_vm0, %v928_v60 }
 0x79c PF: > { %s22_s21 = sadd.s32 1, %s1070_s21  }
 0x79d   : > { %p19_p4 = scmp.ge.s32.totalorder %s22_s21, 4  }
 0x79f   :  { %21 = sbr.rel (!%p19_p4) target bundleno = 1 (0x1), region = 105 }

</bundles_post_ra>
